<compile_context>
chip_gen: v5e
topology: v5e:2x2
jax: 0.10.0
libtpu: 0.0.40
codegen_flags: <defaults>
</compile_context>

<pallas_src>
import functools

import jax
import jax.numpy as jnp
from jax.experimental import pallas as pl
from jax.experimental.pallas import tpu as pltpu

_LANES = 128
_MAX_TILE_ROWS = 8192                      # 8192*128*4B = 4 MiB / input / buffer
_VMEM_LIMIT_BYTES = 32 * 1024 * 1024       # > 2 inputs * 2 buffers * 4 MiB


def _round_up(x, m):
    return ((x + m - 1) // m) * m


def _round_down(x, m):
    return (x // m) * m


def _focal_loss_kernel(x_ref, t_ref, out_ref, *, alpha, gamma, tile_rows,
                       rows_valid, ragged):
    i = pl.program_id(0)
    nsteps = pl.num_programs(0)

    @pl.when(i == 0)
    def _():
        out_ref[...] = jnp.zeros_like(out_ref)

    x = x_ref[...].astype(jnp.float32)
    t = t_ref[...].astype(jnp.float32)

    # Numerically stable BCE-with-logits (matches torch):
    #   bce = max(x, 0) - x*t + log1p(exp(-|x|))
    u = jnp.exp(-jnp.abs(x))
    xt = x * t
    bce = jnp.maximum(x, 0.0) - xt + jnp.log1p(u)

    # at = alpha_vec[targets.long()] with alpha_vec = [alpha, 1 - alpha].
    # TODO(synk): hard {0,1} target assumption (as in the original usage);
    #             fractional/soft targets would need trunc() indexing and the
    #             exact pt = exp(-bce) path.
    pos = t > 0.5
    at = jnp.where(pos, jnp.float32(1.0 - alpha), jnp.float32(alpha))

    # 1 - pt = 1 - exp(-bce) = sigmoid((1-2t)*x) for hard targets.
    # Reuse u = exp(-|x|) (= exp(-|s|)); reciprocal on the EUP + 1 Newton step.
    d = 1.0 + u
    r = pl.reciprocal(d, approx=True)
    inv = r * (2.0 - d * r)                      # ~f32-accurate 1/(1+u)
    s = x - 2.0 * xt                             # (1 - 2t) * x
    omp = jnp.where(s >= 0.0, inv, u * inv)      # sigmoid(s) = 1 - pt

    if gamma == 2.0:                             # trace-time specialization
        g = omp * omp
    elif gamma == 1.0:
        g = omp
    elif gamma == 0.0:
        g = jnp.ones_like(omp)
    else:
        g = omp ** gamma

    focal = at * g * bce

    def _fold(v):
        # Fold the tile into the resident (8, 128) partial-sum block with pure
        # VPU adds (sublane-preserving reshape); no per-step XLU reduction.
        return jnp.sum(v.reshape(tile_rows // 8, 8, _LANES), axis=0)

    if ragged:
        # Only the single boundary tile pays for the mask.
        @pl.when(i == nsteps - 1)
        def _():
            rid = jax.lax.broadcasted_iota(
                jnp.int32, (tile_rows, _LANES), 0) + i * tile_rows
            out_ref[...] += _fold(jnp.where(rid < rows_valid, focal, 0.0))

        @pl.when(i != nsteps - 1)
        def _():
            out_ref[...] += _fold(focal)
    else:
        out_ref[...] += _fold(focal)


def _focal_terms(x, t, alpha, gamma):
    """Plain-jnp per-element focal terms (remainder path + reference)."""
    x = x.astype(jnp.float32)
    t = t.astype(jnp.float32)
    bce = jnp.maximum(x, 0.0) - x * t + jnp.log1p(jnp.exp(-jnp.abs(x)))
    at = jnp.where(t > 0.5, 1.0 - alpha, alpha)
    pt = jnp.exp(-bce)
    return at * (1.0 - pt) ** gamma * bce


def weighted_focal_loss(inputs, targets, alpha=0.25, gamma=2.0):
    """Focal loss over arbitrarily shaped inputs/targets (flattened internally)."""
    alpha = float(alpha)
    gamma = float(gamma)

    x = inputs.reshape(-1)
    t = targets.reshape(-1)
    n = x.shape[0]

    rows = n // _LANES               # rows fully covered by 128 lanes
    rem = n - rows * _LANES          # < 128 leftover elements

    if rows < 8:
        # Tiny input: not worth a kernel launch.
        return jnp.mean(_focal_terms(x, t, alpha, gamma))

    n_main = rows * _LANES
    if rem:
        # <128 leftover elements handled in plain JAX (no full-array jnp.pad).
        x_main, t_main = x[:n_main], t[:n_main]
        tail_sum = jnp.sum(_focal_terms(x[n_main:], t[n_main:], alpha, gamma))
    else:
        x_main, t_main = x, t
        tail_sum = jnp.float32(0.0)

    # Lane-aligned (rows, 128) view; layout-compatible with the flat array.
    x2d = x_main.reshape(rows, _LANES)
    t2d = t_main.reshape(rows, _LANES)

    # Largest tile that (a) is a multiple of 8 rows, (b) never exceeds the
    # array extent, (c) fits comfortably in scoped VMEM when double-buffered.
    tile_rows = min(_MAX_TILE_ROWS, _round_down(rows, 8))
    steps = pl.cdiv(rows, tile_rows)
    ragged = (rows % tile_rows) != 0

    kernel = functools.partial(
        _focal_loss_kernel,
        alpha=alpha, gamma=gamma,
        tile_rows=tile_rows, rows_valid=rows, ragged=ragged,
    )

    bytes_accessed = (x2d.size * x2d.dtype.itemsize
                      + t2d.size * t2d.dtype.itemsize
                      + 8 * _LANES * 4)
    cost = pl.CostEstimate(flops=22 * n_main,
                           transcendentals=3 * n_main,
                           bytes_accessed=bytes_accessed)

    partials = pl.pallas_call(
        kernel,
        out_shape=jax.ShapeDtypeStruct((8, _LANES), jnp.float32),
        grid_spec=pltpu.PrefetchScalarGridSpec(
            num_scalar_prefetch=0,
            grid=(steps,),
            in_specs=[
                pl.BlockSpec((tile_rows, _LANES), lambda i: (i, 0)),
                pl.BlockSpec((tile_rows, _LANES), lambda i: (i, 0)),
            ],
            out_specs=pl.BlockSpec((8, _LANES), lambda i: (0, 0)),
        ),
        compiler_params=pltpu.CompilerParams(
            dimension_semantics=("arbitrary",),
            vmem_limit_bytes=_VMEM_LIMIT_BYTES,
        ),
        cost_estimate=cost,
    )(x2d, t2d)

    # Single tiny cross-lane reduction + mean, outside the hot loop.
    return (jnp.sum(partials) + tail_sum) / jnp.float32(n)


def _reference(inputs, targets, alpha=0.25, gamma=2.0):
    return jnp.mean(_focal_terms(inputs.reshape(-1), targets.reshape(-1),
                                 float(alpha), float(gamma)))


if __name__ == "__main__":
    # Deterministic parameter init (module __init__): alpha = 0.25, gamma = 2.
    ALPHA, GAMMA = 0.25, 2.0

    key = jax.random.PRNGKey(0)
    k_logits, k_targets, k2_logits, k2_targets = jax.random.split(key, 4)

    # Case 1: lane-aligned flat binary-head outputs (single exact block).
    N = 2048
    logits = jax.random.normal(k_logits, (N,), dtype=jnp.float32) * 2.0
    targets = jax.random.bernoulli(k_targets, p=0.3, shape=(N,)).astype(jnp.float32)

    loss = weighted_focal_loss(logits, targets, alpha=ALPHA, gamma=GAMMA)
    loss = jax.block_until_ready(loss)
    ref = _reference(logits, targets, alpha=ALPHA, gamma=GAMMA)
    assert jnp.allclose(loss, ref, rtol=1e-4, atol=1e-6), (loss, ref)

    # Case 2: unaligned N (exercises ragged last block mask + jnp remainder).
    N2 = 5000
    logits2 = jax.random.normal(k2_logits, (N2,), dtype=jnp.float32) * 2.0
    targets2 = jax.random.bernoulli(k2_targets, p=0.3, shape=(N2,)).astype(jnp.float32)

    loss2 = weighted_focal_loss(logits2, targets2, alpha=ALPHA, gamma=GAMMA)
    loss2 = jax.block_until_ready(loss2)
    ref2 = _reference(logits2, targets2, alpha=ALPHA, gamma=GAMMA)
    assert jnp.allclose(loss2, ref2, rtol=1e-4, atol=1e-6), (loss2, ref2)

    print("KERNEL_OK")
</pallas_src>

<mosaic_0001>
module attributes {stable_mosaic.version = 11 : i64} {
  func.func @_focal_loss_kernel(%arg0: i32, %arg1: memref<16x128xf32, #tpu.memory_space<vmem>>, %arg2: memref<16x128xf32, #tpu.memory_space<vmem>>, %arg3: memref<8x128xf32, #tpu.memory_space<vmem>>) attributes {dimension_semantics = [#tpu.dimension_semantics<arbitrary>], iteration_bounds = array<i64: 1>, scalar_prefetch = 0 : i64, scratch_operands = 0 : i64, tpu.core_type = #tpu.core_type<tc>, window_params = [{transform_indices = @transform_0, window_bounds = array<i64: 16, 128>}, {transform_indices = @transform_1, window_bounds = array<i64: 16, 128>}, {pipeline_mode = #tpu.pipeline_mode<synchronous>, transform_indices = @transform_2, window_bounds = array<i64: 8, 128>}]} {
    %c0_i32 = arith.constant 0 : i32
    %0 = arith.cmpi eq, %arg0, %c0_i32 : i32
    %1 = arith.extui %0 : i1 to i32
    %c0_i32_0 = arith.constant 0 : i32
    %2 = arith.cmpi ne, %1, %c0_i32_0 : i32
    scf.if %2 {
      %cst_17 = arith.constant 0.000000e+00 : f32
      %42 = vector.broadcast %cst_17 : f32 to vector<8x128xf32>
      %c0_18 = arith.constant 0 : index
      %c0_19 = arith.constant 0 : index
      %43 = vector.load %arg3[%c0_18, %c0_19] : memref<8x128xf32, #tpu.memory_space<vmem>>, vector<8x128xf32>
      tpu.vector_store %arg3[%c0_18, %c0_19], %42 {strides = array<i32>} : memref<8x128xf32, #tpu.memory_space<vmem>>, vector<8x128xf32>,
    } else {
    }
    %c0 = arith.constant 0 : index
    %c0_1 = arith.constant 0 : index
    %3 = vector.load %arg1[%c0, %c0_1] : memref<16x128xf32, #tpu.memory_space<vmem>>, vector<16x128xf32>
    %c0_2 = arith.constant 0 : index
    %c0_3 = arith.constant 0 : index
    %4 = vector.load %arg2[%c0_2, %c0_3] : memref<16x128xf32, #tpu.memory_space<vmem>>, vector<16x128xf32>
    %5 = math.absf %3 : vector<16x128xf32>
    %cst = arith.constant 0.000000e+00 : f32
    %6 = vector.broadcast %cst : f32 to vector<16x128xf32>
    %7 = arith.subf %6, %5 : vector<16x128xf32>
    %8 = math.exp %7 : vector<16x128xf32>
    %9 = arith.mulf %3, %4 : vector<16x128xf32>
    %cst_4 = arith.constant 0.000000e+00 : f32
    %10 = vector.broadcast %cst_4 : f32 to vector<16x128xf32>
    %11 = arith.maximumf %3, %10 : vector<16x128xf32>
    %12 = arith.subf %11, %9 : vector<16x128xf32>
    %13 = math.log1p %8 : vector<16x128xf32>
    %14 = arith.addf %12, %13 : vector<16x128xf32>
    %cst_5 = arith.constant 5.000000e-01 : f32
    %15 = vector.broadcast %cst_5 : f32 to vector<16x128xf32>
    %16 = arith.cmpf ogt, %4, %15 : vector<16x128xf32>
    %cst_6 = arith.constant 7.500000e-01 : f32
    %cst_7 = arith.constant 2.500000e-01 : f32
    %17 = vector.broadcast %cst_6 : f32 to vector<16x128xf32>
    %18 = vector.broadcast %cst_7 : f32 to vector<16x128xf32>
    %19 = arith.select %16, %17, %18 : vector<16x128xi1>, vector<16x128xf32>
    %cst_8 = arith.constant 1.000000e+00 : f32
    %20 = vector.broadcast %cst_8 : f32 to vector<16x128xf32>
    %21 = arith.addf %20, %8 : vector<16x128xf32>
    %22 = tpu.reciprocal %21 {approx = true} : vector<16x128xf32> -> vector<16x128xf32>
    %23 = arith.mulf %21, %22 : vector<16x128xf32>
    %cst_9 = arith.constant 2.000000e+00 : f32
    %24 = vector.broadcast %cst_9 : f32 to vector<16x128xf32>
    %25 = arith.subf %24, %23 : vector<16x128xf32>
    %26 = arith.mulf %22, %25 : vector<16x128xf32>
    %cst_10 = arith.constant 2.000000e+00 : f32
    %27 = vector.broadcast %cst_10 : f32 to vector<16x128xf32>
    %28 = arith.mulf %27, %9 : vector<16x128xf32>
    %29 = arith.subf %3, %28 : vector<16x128xf32>
    %cst_11 = arith.constant 0.000000e+00 : f32
    %30 = vector.broadcast %cst_11 : f32 to vector<16x128xf32>
    %31 = arith.cmpf oge, %29, %30 : vector<16x128xf32>
    %32 = arith.mulf %8, %26 : vector<16x128xf32>
    %33 = arith.select %31, %26, %32 : vector<16x128xi1>, vector<16x128xf32>
    %34 = arith.mulf %33, %33 : vector<16x128xf32>
    %35 = arith.mulf %19, %34 : vector<16x128xf32>
    %36 = arith.mulf %35, %14 : vector<16x128xf32>
    %c0_12 = arith.constant 0 : index
    %c0_13 = arith.constant 0 : index
    %37 = vector.load %arg3[%c0_12, %c0_13] : memref<8x128xf32, #tpu.memory_space<vmem>>, vector<8x128xf32>
    %38 = vector.shape_cast %36 : vector<16x128xf32> to vector<2x8x128xf32>
    %cst_14 = arith.constant dense<0.000000e+00> : vector<8x128xf32>
    %39 = vector.multi_reduction <add>, %38, %cst_14 [0] : vector<2x8x128xf32> to vector<8x128xf32>
    %40 = arith.addf %37, %39 : vector<8x128xf32>
    %c0_15 = arith.constant 0 : index
    %c0_16 = arith.constant 0 : index
    %41 = vector.load %arg3[%c0_15, %c0_16] : memref<8x128xf32, #tpu.memory_space<vmem>>, vector<8x128xf32>
    tpu.vector_store %arg3[%c0_15, %c0_16], %40 {strides = array<i32>} : memref<8x128xf32, #tpu.memory_space<vmem>>, vector<8x128xf32>,
    return
  }
  func.func @transform_0(%arg0: i32) -> (i32, i32) {
    %c0_i32 = arith.constant 0 : i32
    %c0_i32_0 = arith.constant 0 : i32
    return %arg0, %c0_i32 : i32, i32
  }
  func.func @transform_1(%arg0: i32) -> (i32, i32) {
    %c0_i32 = arith.constant 0 : i32
    %c0_i32_0 = arith.constant 0 : i32
    return %arg0, %c0_i32 : i32, i32
  }
  func.func @transform_2(%arg0: i32) -> (i32, i32) {
    %c0_i32 = arith.constant 0 : i32
    %c0_i32_0 = arith.constant 0 : i32
    %c0_i32_1 = arith.constant 0 : i32
    return %c0_i32, %c0_i32_0 : i32, i32
  }
}

</mosaic_0001>

<bundles_post_ra>
// kernel: tpu_custom_call.1
= control target key start
LH: loop header
LB: loop body
LE: loop exit
PB: predicated region body
PF: predicated region fallthrough
CT: control target
= control target key end

     0   :  { %7 = vsyncpa [#allocation3], 0  ;;  %s278_s0 = inlined_call_operand.hbm [shape: f32[16,128], index: 0, kind: input, shape index: {}]   ;;  %s279_s1 = inlined_call_operand.hbm [shape: f32[16,128], index: 1, kind: input, shape index: {}]   ;;  %s280_s2 = inlined_call_operand.hbm [shape: f32[8,128], index: 2, kind: output, shape index: {}]  }
   0x1   :  { %8 = vsyncpa [#allocation6], 0 }
   0x2   :  { %9 = vsyncpa [#allocation4], 0  ;;  %s14_s11 = sshll.u32 %s278_s0, 4  ;;  %s236_s12 = smov [#allocation2]   ;;  %s15_s11 = int_to_ptr.hbm [resolvable:$true] %s14_s11 }
   0x3   :  { %s16_s13 = sshll.u32 %s236_s12, 4  ;;  %s27_s16 = sshll.u32 %s279_s1, 4  ;;  %s17_s13 = int_to_ptr.vmem [resolvable:$true] %s16_s13  ;;  %s28_s16 = int_to_ptr.hbm [resolvable:$true] %s27_s16 }
   0x4   :  { %s237_s17 = smov 128   ;;  %s238_s18 = smov 8  }
   0x5   :  { %22 = dma.hbm_to_vmem [thread:$0]  %s15_s11, 256, %s17_s13, [#allocation3], %s237_s17, %s237_s17, %s238_s18  }
   0x6   :  { %s239_s19 = smov [#allocation5]  }
   0x7   :  { %s29_s20 = sshll.u32 %s239_s19, 4  ;;  %s30_s20 = int_to_ptr.vmem [resolvable:$true] %s29_s20 }
   0x8   :  { %35 = dma.hbm_to_vmem [thread:$0]  %s28_s16, 256, %s30_s20, [#allocation6], %s237_s17, %s237_s17, %s238_s18  }
   0x9   :  { %230 = dma.done.wait [#allocation3], 256  }
   0xa   :  { %231 = vsyncadd [#allocation3], 4294967040 }
   0xb   :  { %232 = dma.done.wait [#allocation6], 256  }
   0xc   :  { %233 = vsyncadd [#allocation6], 4294967040  ;;  %v49_v0 = vld [vmem:[#allocation2] sm:$0xff]  ;;  %v50_v1 = vld [vmem:[#allocation2 + $0x8] sm:$0xff]  ;;  %v240_v50 = vmov 0.25   ;;  %s241_s0 = smov [#allocation7]  }
   0xd   :  { %v53_v2 = vand.u32 2147483647, %v49_v0  ;;  %v54_v3 = vand.u32 2147483647, %v50_v1  ;;  %v51_v11 = vld [vmem:[#allocation5] sm:$0xff]  ;;  %v52_v13 = vld [vmem:[#allocation5 + $0x8] sm:$0xff] }
   0xe   :  { %v61_v14 = vmul.f32 %v51_v11, %v49_v0  ;;  %v62_v15 = vmul.f32 %v52_v13, %v50_v1  ;;  %v63_v29 = vmax.f32 %v49_v0, 0.0  ;;  %v64_v30 = vmax.f32 %v50_v1, 0.0  ;;  %s126_s1 = sshll.u32 %s241_s0, 4  ;;  %s128_s23 = sshll.u32 %s280_s2, 4  ;;  %s127_s1 = int_to_ptr.vmem [resolvable:$true] %s126_s1  ;;  %s129_s23 = int_to_ptr.hbm [resolvable:$true] %s128_s23 }
   0xf   :  { %v55_v4 = vsub.f32 0.0, %v53_v2  ;;  %v56_v5 = vsub.f32 0.0, %v54_v3  ;;  %vm87_vm2 = vcmp.gt.f32.partialorder %v51_v11, 0.5  ;;  %vm88_vm3 = vcmp.gt.f32.partialorder %v52_v13, 0.5 }
  0x10   :  { %v101_v19 = vmul.f32 2.0, %v61_v14  ;;  %v102_v22 = vmul.f32 2.0, %v62_v15  ;;  %v65_v43 = vsub.f32 %v63_v29, %v61_v14  ;;  %v66_v45 = vsub.f32 %v64_v30, %v62_v15 }
  0x11   :  { %v57_v6 = vmul.f32 1.442695, %v55_v4  ;;  %v59_v7 = vmul.f32 1.442695, %v56_v5  ;;  %v89_v51 = vsel %vm87_vm2, 0.75, %v240_v50  ;;  %v90_v54 = vsel %vm88_vm3, 0.75, %v240_v50 }
  0x12   :  { %v103_v32 = vsub.f32 %v49_v0, %v101_v19  ;;  %v104_v36 = vsub.f32 %v50_v1, %v102_v22 }
  0x13   :  { %146 = vpow2.f32 %v57_v6 }
  0x14   :  { %148 = vpow2.f32 %v59_v7  ;;  %vm105_vm4 = vcmp.ge.f32.partialorder %v103_v32, 0.0  ;;  %vm106_vm5 = vcmp.ge.f32.partialorder %v104_v36, 0.0 }
  0x19   :  { %v147_v8 = vpop.eup %146 }
  0x1a   :  { %v149_v9 = vpop.eup %148  ;;  %v67_v10 = vadd.f32 1.0, %v147_v8  ;;  %v70_v16 = vmul.f32 -0.5, %v147_v8  ;;  %v73_v24 = vand.u32 2147483647, %v147_v8 }
  0x1b   :  { %v76_v12 = vadd.f32 1.0, %v149_v9  ;;  %v79_v17 = vmul.f32 -0.5, %v149_v9  ;;  %v82_v27 = vand.u32 2147483647, %v149_v9 }
  0x1c   :  { %150 = vlog2.f32 %v67_v10  ;;  %v71_v21 = vadd.f32 1.0, %v70_v16  ;;  %vm263_vm0 = vcmp.lt.f32.partialorder %v73_v24, 0.0004427343 }
  0x1d   :  { %152 = vlog2.f32 %v76_v12  ;;  %v80_v25 = vadd.f32 1.0, %v79_v17  ;;  %vm267_vm1 = vcmp.lt.f32.partialorder %v82_v27, 0.0004427343 }
  0x1e   :  { %154 = vrcp.f32 %v67_v10  ;;  %v72_v34 = vmul.f32 %v147_v8, %v71_v21 }
  0x1f   :  { %156 = vrcp.f32 %v76_v12  ;;  %v81_v39 = vmul.f32 %v149_v9, %v80_v25 }
  0x22   :  { %v151_v18 = vpop.eup %150 }
  0x23   :  { %v153_v20 = vpop.eup %152  ;;  %v69_v33 = vmul.f32 0.6931472, %v151_v18 }
  0x24   :  { %v155_v23 = vpop.eup %154  ;;  %v78_v38 = vmul.f32 0.6931472, %v153_v20 }
  0x25   :  { %v157_v26 = vpop.eup %156  ;;  %v95_v28 = vmul.f32 %v155_v23, %v67_v10  ;;  %v75_v46 = vsel %vm263_vm0, %v72_v34, %v69_v33 }
  0x26   :  { %v96_v31 = vmul.f32 %v157_v26, %v76_v12  ;;  %v84_v48 = vsel %vm267_vm1, %v81_v39, %v78_v38  ;;  %v85_v53 = vadd.f32 %v75_v46, %v65_v43 }
  0x27   :  { %v97_v35 = vsub.f32 2.0, %v95_v28  ;;  %v86_v57 = vadd.f32 %v84_v48, %v66_v45 }
  0x28   :  { %v98_v40 = vsub.f32 2.0, %v96_v31 }
  0x29   :  { %v99_v42 = vmul.f32 %v155_v23, %v97_v35 }
  0x2a   :  { %v100_v44 = vmul.f32 %v157_v26, %v98_v40 }
  0x2b   :  { %v107_v47 = vmul.f32 %v147_v8, %v99_v42 }
  0x2c   :  { %v108_v49 = vmul.f32 %v149_v9, %v100_v44 }
  0x2d   :  { %v109_v52 = vsel %vm105_vm4, %v99_v42, %v107_v47 }
  0x2e   :  { %v110_v55 = vsel %vm106_vm5, %v100_v44, %v108_v49  ;;  %v111_v56 = vmul.f32 %v109_v52, %v109_v52 }
  0x2f   :  { %v112_v58 = vmul.f32 %v110_v55, %v110_v55 }
  0x30   :  { %v113_v59 = vmul.f32 %v111_v56, %v89_v51 }
  0x31   :  { %v114_v60 = vmul.f32 %v112_v58, %v90_v54 }
  0x32   :  { %v115_v61 = vmul.f32 %v113_v59, %v85_v53 }
  0x33   :  { %v116_v62 = vmul.f32 %v114_v60, %v86_v57 }
  0x35   :  { %v118_v63 = vadd.f32 %v116_v62, %v115_v61 }
  0x37   :  { %120 = vst [vmem:[#allocation7] sm:$0xff] %v118_v63 }
  0x38   :  { %131 = dma.vmem_to_hbm [thread:$0]  %s127_s1, 128, %s129_s23, [#allocation4]  }
  0x39   :  { %234 = dma.done.wait [#allocation4], 128  }
  0x3a   :  { %235 = vsyncadd [#allocation4], 4294967168 }
  0x3b   :  { %136 = vsyncpa [#allocation3], 1 }
  0x3c   :  { %137 = vsyncpa [#allocation6], 1 }
  0x3d   :  { %138 = vsyncpa [#allocation4], 1 }

</bundles_post_ra>
